<compile_context>
chip_gen: v7x
topology: tpu7x:2x2x1
jax: 0.10.0
libtpu: 0.0.40
codegen_flags: <defaults>
</compile_context>

<pallas_src>
import math
import functools

import jax
import jax.numpy as jnp
from jax import lax
from jax.experimental import pallas as pl
from jax.experimental.pallas import tpu as pltpu


def _round_up(v, m):
    return (v + m - 1) // m * m


def arcface_kernel(lbl_ref, x_ref, w_ref, loss_ref,
                   l_scr, tgt_scr, sum_scr, *,
                   s, cos_m, sin_m, th, mm, eps_smooth,
                   num_classes, easy_margin, needs_class_mask):
    c = pl.program_id(1)
    nc_steps = pl.num_programs(1)
    tc = w_ref.shape[1]

    @pl.when(c == 0)
    def _():
        l_scr[...] = jnp.zeros_like(l_scr)
        tgt_scr[...] = jnp.zeros_like(tgt_scr)
        sum_scr[...] = jnp.zeros_like(sum_scr)

    # x was pre-normalized and pre-scaled by s, weight pre-normalized and
    # pre-transposed to (D, C); both bf16.  MXU emits s*cosine in f32 directly.
    logits = jnp.dot(x_ref[...], w_ref[...],
                     preferred_element_type=jnp.float32)      # (tb, tc)
    tb = logits.shape[0]

    # In-kernel one-hot for this class tile (no materialized (B,C) stream).
    col = c * tc + lax.broadcasted_iota(jnp.int32, (tb, tc), 1)
    lbl = lbl_ref[...]                                        # (tb, 1) int32
    mask = (col == lbl).astype(jnp.float32)

    # ArcFace margin only on the (tb, 1) target entries.
    inv_s = 1.0 / s
    cos_t = jnp.sum(logits * mask, axis=-1, keepdims=True) * inv_s   # (tb, 1)
    sin_t = jnp.sqrt(jnp.maximum(1.0 - cos_t * cos_t, 0.0))          # clamped
    phi_t = cos_t * cos_m - sin_t * sin_m
    if easy_margin:
        phi_t = jnp.where(cos_t > 0.0, phi_t, cos_t)
    else:
        phi_t = jnp.where(cos_t > th, phi_t, cos_t - mm)
    delta = (phi_t - cos_t) * s                                       # (tb, 1)

    # logits = s*cosine everywhere, corrected only at the target column.
    logits = logits + mask * delta                                    # (tb, tc)

    def accumulate(lg_lse, lg_sum):
        # Running sums for label-smoothed CE:
        #   loss_i = lse_i - (1-eps)*logit_target_i - (eps/C)*sum_c logits_ic
        # Static LSE shift = s (all logits <= s by construction); exp(lg - s)
        # bottoms out ~1e-29, safely representable in f32.
        sum_scr[...] += jnp.sum(lg_sum, axis=-1, keepdims=True)
        tgt_scr[...] += jnp.sum(mask * lg_lse, axis=-1, keepdims=True)
        l_scr[...] += jnp.sum(jnp.exp(lg_lse - s), axis=-1, keepdims=True)

    if needs_class_mask:
        # Padding only exists in the last C tile; keep every other step clean.
        @pl.when(c < nc_steps - 1)
        def _():
            accumulate(logits, logits)

        @pl.when(c == nc_steps - 1)
        def _():
            valid = col < num_classes
            accumulate(jnp.where(valid, logits, -1e30),
                       jnp.where(valid, logits, 0.0))
    else:
        accumulate(logits, logits)

    @pl.when(c == nc_steps - 1)
    def _():
        lse = s + jnp.log(l_scr[...])
        loss_ref[...] = lse - ((1.0 - eps_smooth) * tgt_scr[...]
                               + (eps_smooth / num_classes) * sum_scr[...])


def arcface_loss(x, weight, labels, *, s=30.0, m=0.4, easy_margin=False,
                 label_smooth=True, block_b=256, block_c=1024,
                 vmem_limit_bytes=None):
    B, D = x.shape
    C, D2 = weight.shape
    assert D == D2

    # Lane/sublane-friendly padding (bf16 => 16 sublanes per vreg for tb).
    d_pad = _round_up(D, 128)
    tb = min(_round_up(B, 16), _round_up(block_b, 16))
    b_pad = _round_up(B, tb)
    tc = min(_round_up(C, 128), _round_up(block_c, 128))
    c_pad = _round_up(C, tc)

    # F.normalize (L2, eps=1e-12) once in XLA; fold s into x; cast to bf16
    # (halves streamed-weight HBM bytes).  Normalize BEFORE zero-padding.
    x32 = x.astype(jnp.float32)
    w32 = weight.astype(jnp.float32)
    xn = x32 * (s * lax.rsqrt(
        jnp.maximum(jnp.sum(x32 * x32, axis=-1, keepdims=True), 1e-24)))
    wn = w32 * lax.rsqrt(
        jnp.maximum(jnp.sum(w32 * w32, axis=-1, keepdims=True), 1e-24))

    x_p = jnp.zeros((b_pad, d_pad), jnp.bfloat16).at[:B, :D].set(
        xn.astype(jnp.bfloat16))
    # Pre-transposed to (D, C): MXU-native RHS, no in-kernel transpose.
    w_p = jnp.zeros((d_pad, c_pad), jnp.bfloat16).at[:D, :C].set(
        wn.T.astype(jnp.bfloat16))
    lbl_p = jnp.zeros((b_pad, 1), jnp.int32).at[:B, 0].set(
        labels.astype(jnp.int32))

    kernel = functools.partial(
        arcface_kernel,
        s=float(s),
        cos_m=math.cos(m),
        sin_m=math.sin(m),
        th=math.cos(math.pi - m),
        mm=math.sin(math.pi - m) * m,
        eps_smooth=0.1 if label_smooth else 0.0,
        num_classes=C,                       # real class count (not tile width)
        easy_margin=bool(easy_margin),
        needs_class_mask=(c_pad != C),
    )

    per_sample = pl.pallas_call(
        kernel,
        out_shape=jax.ShapeDtypeStruct((b_pad, 1), jnp.float32),
        grid=(b_pad // tb, c_pad // tc),     # reduction (C) axis last
        in_specs=[
            pl.BlockSpec((tb, 1), lambda b, c: (b, 0)),       # labels (int32)
            pl.BlockSpec((tb, d_pad), lambda b, c: (b, 0)),   # s * normalized x
            pl.BlockSpec((d_pad, tc), lambda b, c: (0, c)),   # normalized W^T
        ],
        out_specs=pl.BlockSpec((tb, 1), lambda b, c: (b, 0)),
        scratch_shapes=[pltpu.VMEM((tb, 1), jnp.float32)] * 3,  # l, tgt, sum
        compiler_params=pltpu.CompilerParams(
            dimension_semantics=("parallel", "arbitrary"),
            vmem_limit_bytes=vmem_limit_bytes),
    )(lbl_p, x_p, w_p)

    # torchreid CrossEntropyLoss: (-targets * log_probs).mean(0).sum()
    return jnp.mean(per_sample[:B, 0])


if __name__ == "__main__":
    key = jax.random.PRNGKey(0)
    k_x, k_w, k_lbl = jax.random.split(key, 3)

    batch = 8
    in_features = 64
    out_features = 32

    # deterministic inputs
    x = jax.random.normal(k_x, (batch, in_features), dtype=jnp.float32)

    # xavier_uniform_ init for weight of shape (out_features, in_features)
    bound = math.sqrt(6.0 / (in_features + out_features))
    weight = jax.random.uniform(
        k_w, (out_features, in_features), dtype=jnp.float32,
        minval=-bound, maxval=bound)

    labels = jax.random.randint(k_lbl, (batch,), 0, out_features, dtype=jnp.int32)

    loss = arcface_loss(x, weight, labels, s=30.0, m=0.4,
                        easy_margin=False, label_smooth=True)
    jax.block_until_ready(loss)
    print("KERNEL_OK")
</pallas_src>

<mosaic_0001>
module attributes {stable_mosaic.version = 11 : i64} {
  func.func @arcface_kernel(%arg0: i32, %arg1: i32, %arg2: memref<16x1xi32, #tpu.memory_space<vmem>>, %arg3: memref<16x128xbf16, #tpu.memory_space<vmem>>, %arg4: memref<128x128xbf16, #tpu.memory_space<vmem>>, %arg5: memref<16x1xf32, #tpu.memory_space<vmem>>, %arg6: memref<16x1xf32, #tpu.memory_space<vmem>>, %arg7: memref<16x1xf32, #tpu.memory_space<vmem>>, %arg8: memref<16x1xf32, #tpu.memory_space<vmem>>) attributes {dimension_semantics = [#tpu.dimension_semantics<parallel>, #tpu.dimension_semantics<arbitrary>], iteration_bounds = array<i64: 1, 1>, scalar_prefetch = 0 : i64, scratch_operands = 3 : i64, tpu.core_type = #tpu.core_type<tc>, window_params = [{transform_indices = @transform_0, window_bounds = array<i64: 16, 1>}, {transform_indices = @transform_1, window_bounds = array<i64: 16, 128>}, {transform_indices = @transform_2, window_bounds = array<i64: 128, 128>}, {transform_indices = @transform_3, window_bounds = array<i64: 16, 1>}]} {
    %c0_i32 = arith.constant 0 : i32
    %0 = arith.cmpi eq, %arg1, %c0_i32 : i32
    %1 = arith.extui %0 : i1 to i32
    %c0_i32_0 = arith.constant 0 : i32
    %2 = arith.cmpi ne, %1, %c0_i32_0 : i32
    scf.if %2 {
      %cst_21 = arith.constant 0.000000e+00 : f32
      %51 = vector.broadcast %cst_21 : f32 to vector<16x1xf32>
      %c0_22 = arith.constant 0 : index
      %c0_23 = arith.constant 0 : index
      %52 = vector.load %arg6[%c0_22, %c0_23] : memref<16x1xf32, #tpu.memory_space<vmem>>, vector<16x1xf32>
      tpu.vector_store %arg6[%c0_22, %c0_23], %51 {strides = array<i32>} : memref<16x1xf32, #tpu.memory_space<vmem>>, vector<16x1xf32>,
      %cst_24 = arith.constant 0.000000e+00 : f32
      %53 = vector.broadcast %cst_24 : f32 to vector<16x1xf32>
      %c0_25 = arith.constant 0 : index
      %c0_26 = arith.constant 0 : index
      %54 = vector.load %arg7[%c0_25, %c0_26] : memref<16x1xf32, #tpu.memory_space<vmem>>, vector<16x1xf32>
      tpu.vector_store %arg7[%c0_25, %c0_26], %53 {strides = array<i32>} : memref<16x1xf32, #tpu.memory_space<vmem>>, vector<16x1xf32>,
      %cst_27 = arith.constant 0.000000e+00 : f32
      %55 = vector.broadcast %cst_27 : f32 to vector<16x1xf32>
      %c0_28 = arith.constant 0 : index
      %c0_29 = arith.constant 0 : index
      %56 = vector.load %arg8[%c0_28, %c0_29] : memref<16x1xf32, #tpu.memory_space<vmem>>, vector<16x1xf32>
      tpu.vector_store %arg8[%c0_28, %c0_29], %55 {strides = array<i32>} : memref<16x1xf32, #tpu.memory_space<vmem>>, vector<16x1xf32>,
    } else {
    }
    %c0 = arith.constant 0 : index
    %c0_1 = arith.constant 0 : index
    %3 = vector.load %arg3[%c0, %c0_1] : memref<16x128xbf16, #tpu.memory_space<vmem>>, vector<16x128xbf16>
    %c0_2 = arith.constant 0 : index
    %c0_3 = arith.constant 0 : index
    %4 = vector.load %arg4[%c0_2, %c0_3] : memref<128x128xbf16, #tpu.memory_space<vmem>>, vector<128x128xbf16>
    %cst = arith.constant dense<0.000000e+00> : vector<16x128xf32>
    %5 = tpu.matmul %3, %4, %cst {dimension_numbers = #tpu.dot_dimension_numbers<[1], [0], [0], [1], [0, 0, 1, 1], [], []>} : vector<16x128xbf16>, vector<128x128xbf16>, vector<16x128xf32> -> vector<16x128xf32>
    %c128_i32 = arith.constant 128 : i32
    %6 = arith.muli %arg1, %c128_i32 : i32
    %7 = tpu.iota {dimensions = array<i32: 1>} : vector<16x128xi32>
    %8 = vector.broadcast %6 : i32 to vector<16x128xi32>
    %9 = arith.addi %8, %7 : vector<16x128xi32>
    %c0_4 = arith.constant 0 : index
    %c0_5 = arith.constant 0 : index
    %10 = vector.load %arg2[%c0_4, %c0_5] : memref<16x1xi32, #tpu.memory_space<vmem>>, vector<16x1xi32>
    %11 = vector.broadcast %10 : vector<16x1xi32> to vector<16x128xi32>
    %12 = arith.cmpi eq, %9, %11 : vector<16x128xi32>
    %13 = arith.extui %12 : vector<16x128xi1> to vector<16x128xi32>
    %14 = arith.sitofp %13 : vector<16x128xi32> to vector<16x128xf32>
    %15 = arith.mulf %5, %14 : vector<16x128xf32>
    %cst_6 = arith.constant dense<0.000000e+00> : vector<16xf32>
    %16 = vector.multi_reduction <add>, %15, %cst_6 [1] : vector<16x128xf32> to vector<16xf32>
    %17 = vector.shape_cast %16 : vector<16xf32> to vector<16x1xf32>
    %cst_7 = arith.constant 0.0333333351 : f32
    %18 = vector.broadcast %cst_7 : f32 to vector<16x1xf32>
    %19 = arith.mulf %17, %18 : vector<16x1xf32>
    %20 = arith.mulf %19, %19 : vector<16x1xf32>
    %cst_8 = arith.constant 1.000000e+00 : f32
    %21 = vector.broadcast %cst_8 : f32 to vector<16x1xf32>
    %22 = arith.subf %21, %20 : vector<16x1xf32>
    %cst_9 = arith.constant 0.000000e+00 : f32
    %23 = vector.broadcast %cst_9 : f32 to vector<16x1xf32>
    %24 = arith.maximumf %22, %23 : vector<16x1xf32>
    %25 = math.sqrt %24 : vector<16x1xf32>
    %cst_10 = arith.constant 0.921060979 : f32
    %26 = vector.broadcast %cst_10 : f32 to vector<16x1xf32>
    %27 = arith.mulf %19, %26 : vector<16x1xf32>
    %cst_11 = arith.constant 0.389418334 : f32
    %28 = vector.broadcast %cst_11 : f32 to vector<16x1xf32>
    %29 = arith.mulf %25, %28 : vector<16x1xf32>
    %30 = arith.subf %27, %29 : vector<16x1xf32>
    %cst_12 = arith.constant -0.921060979 : f32
    %31 = vector.broadcast %cst_12 : f32 to vector<16x1xf32>
    %32 = arith.cmpf ogt, %19, %31 : vector<16x1xf32>
    %cst_13 = arith.constant 0.155767336 : f32
    %33 = vector.broadcast %cst_13 : f32 to vector<16x1xf32>
    %34 = arith.subf %19, %33 : vector<16x1xf32>
    %35 = arith.select %32, %30, %34 : vector<16x1xi1>, vector<16x1xf32>
    %36 = arith.subf %35, %19 : vector<16x1xf32>
    %cst_14 = arith.constant 3.000000e+01 : f32
    %37 = vector.broadcast %cst_14 : f32 to vector<16x1xf32>
    %38 = arith.mulf %36, %37 : vector<16x1xf32>
    %39 = vector.broadcast %38 : vector<16x1xf32> to vector<16x128xf32>
    %40 = arith.mulf %14, %39 : vector<16x128xf32>
    %41 = arith.addf %5, %40 : vector<16x128xf32>
    %c0_i32_15 = arith.constant 0 : i32
    %42 = arith.cmpi slt, %arg1, %c0_i32_15 : i32
    %43 = arith.extui %42 : i1 to i32
    %c0_i32_16 = arith.constant 0 : i32
    %44 = arith.cmpi ne, %43, %c0_i32_16 : i32
    scf.if %44 {
      %c0_21 = arith.constant 0 : index
      %c0_22 = arith.constant 0 : index
      %51 = vector.load %arg8[%c0_21, %c0_22] : memref<16x1xf32, #tpu.memory_space<vmem>>, vector<16x1xf32>
      %cst_23 = arith.constant dense<0.000000e+00> : vector<16xf32>
      %52 = vector.multi_reduction <add>, %41, %cst_23 [1] : vector<16x128xf32> to vector<16xf32>
      %53 = vector.shape_cast %52 : vector<16xf32> to vector<16x1xf32>
      %54 = arith.addf %51, %53 : vector<16x1xf32>
      %c0_24 = arith.constant 0 : index
      %c0_25 = arith.constant 0 : index
      %55 = vector.load %arg8[%c0_24, %c0_25] : memref<16x1xf32, #tpu.memory_space<vmem>>, vector<16x1xf32>
      tpu.vector_store %arg8[%c0_24, %c0_25], %54 {strides = array<i32>} : memref<16x1xf32, #tpu.memory_space<vmem>>, vector<16x1xf32>,
      %c0_26 = arith.constant 0 : index
      %c0_27 = arith.constant 0 : index
      %56 = vector.load %arg7[%c0_26, %c0_27] : memref<16x1xf32, #tpu.memory_space<vmem>>, vector<16x1xf32>
      %57 = arith.mulf %14, %41 : vector<16x128xf32>
      %cst_28 = arith.constant dense<0.000000e+00> : vector<16xf32>
      %58 = vector.multi_reduction <add>, %57, %cst_28 [1] : vector<16x128xf32> to vector<16xf32>
      %59 = vector.shape_cast %58 : vector<16xf32> to vector<16x1xf32>
      %60 = arith.addf %56, %59 : vector<16x1xf32>
      %c0_29 = arith.constant 0 : index
      %c0_30 = arith.constant 0 : index
      %61 = vector.load %arg7[%c0_29, %c0_30] : memref<16x1xf32, #tpu.memory_space<vmem>>, vector<16x1xf32>
      tpu.vector_store %arg7[%c0_29, %c0_30], %60 {strides = array<i32>} : memref<16x1xf32, #tpu.memory_space<vmem>>, vector<16x1xf32>,
      %c0_31 = arith.constant 0 : index
      %c0_32 = arith.constant 0 : index
      %62 = vector.load %arg6[%c0_31, %c0_32] : memref<16x1xf32, #tpu.memory_space<vmem>>, vector<16x1xf32>
      %cst_33 = arith.constant 3.000000e+01 : f32
      %63 = vector.broadcast %cst_33 : f32 to vector<16x128xf32>
      %64 = arith.subf %41, %63 : vector<16x128xf32>
      %65 = math.exp %64 : vector<16x128xf32>
      %cst_34 = arith.constant dense<0.000000e+00> : vector<16xf32>
      %66 = vector.multi_reduction <add>, %65, %cst_34 [1] : vector<16x128xf32> to vector<16xf32>
      %67 = vector.shape_cast %66 : vector<16xf32> to vector<16x1xf32>
      %68 = arith.addf %62, %67 : vector<16x1xf32>
      %c0_35 = arith.constant 0 : index
      %c0_36 = arith.constant 0 : index
      %69 = vector.load %arg6[%c0_35, %c0_36] : memref<16x1xf32, #tpu.memory_space<vmem>>, vector<16x1xf32>
      tpu.vector_store %arg6[%c0_35, %c0_36], %68 {strides = array<i32>} : memref<16x1xf32, #tpu.memory_space<vmem>>, vector<16x1xf32>,
    } else {
    }
    %c0_i32_17 = arith.constant 0 : i32
    %45 = arith.cmpi eq, %arg1, %c0_i32_17 : i32
    %46 = arith.extui %45 : i1 to i32
    %c0_i32_18 = arith.constant 0 : i32
    %47 = arith.cmpi ne, %46, %c0_i32_18 : i32
    scf.if %47 {
      %c32_i32 = arith.constant 32 : i32
      %51 = vector.broadcast %c32_i32 : i32 to vector<16x128xi32>
      %52 = arith.cmpi slt, %9, %51 : vector<16x128xi32>
      %cst_21 = arith.constant -1.000000e+30 : f32
      %53 = vector.broadcast %cst_21 : f32 to vector<16x128xf32>
      %54 = arith.select %52, %41, %53 : vector<16x128xi1>, vector<16x128xf32>
      %cst_22 = arith.constant 0.000000e+00 : f32
      %55 = vector.broadcast %cst_22 : f32 to vector<16x128xf32>
      %56 = arith.select %52, %41, %55 : vector<16x128xi1>, vector<16x128xf32>
      %c0_23 = arith.constant 0 : index
      %c0_24 = arith.constant 0 : index
      %57 = vector.load %arg8[%c0_23, %c0_24] : memref<16x1xf32, #tpu.memory_space<vmem>>, vector<16x1xf32>
      %cst_25 = arith.constant dense<0.000000e+00> : vector<16xf32>
      %58 = vector.multi_reduction <add>, %56, %cst_25 [1] : vector<16x128xf32> to vector<16xf32>
      %59 = vector.shape_cast %58 : vector<16xf32> to vector<16x1xf32>
      %60 = arith.addf %57, %59 : vector<16x1xf32>
      %c0_26 = arith.constant 0 : index
      %c0_27 = arith.constant 0 : index
      %61 = vector.load %arg8[%c0_26, %c0_27] : memref<16x1xf32, #tpu.memory_space<vmem>>, vector<16x1xf32>
      tpu.vector_store %arg8[%c0_26, %c0_27], %60 {strides = array<i32>} : memref<16x1xf32, #tpu.memory_space<vmem>>, vector<16x1xf32>,
      %c0_28 = arith.constant 0 : index
      %c0_29 = arith.constant 0 : index
      %62 = vector.load %arg7[%c0_28, %c0_29] : memref<16x1xf32, #tpu.memory_space<vmem>>, vector<16x1xf32>
      %63 = arith.mulf %14, %54 : vector<16x128xf32>
      %cst_30 = arith.constant dense<0.000000e+00> : vector<16xf32>
      %64 = vector.multi_reduction <add>, %63, %cst_30 [1] : vector<16x128xf32> to vector<16xf32>
      %65 = vector.shape_cast %64 : vector<16xf32> to vector<16x1xf32>
      %66 = arith.addf %62, %65 : vector<16x1xf32>
      %c0_31 = arith.constant 0 : index
      %c0_32 = arith.constant 0 : index
      %67 = vector.load %arg7[%c0_31, %c0_32] : memref<16x1xf32, #tpu.memory_space<vmem>>, vector<16x1xf32>
      tpu.vector_store %arg7[%c0_31, %c0_32], %66 {strides = array<i32>} : memref<16x1xf32, #tpu.memory_space<vmem>>, vector<16x1xf32>,
      %c0_33 = arith.constant 0 : index
      %c0_34 = arith.constant 0 : index
      %68 = vector.load %arg6[%c0_33, %c0_34] : memref<16x1xf32, #tpu.memory_space<vmem>>, vector<16x1xf32>
      %cst_35 = arith.constant 3.000000e+01 : f32
      %69 = vector.broadcast %cst_35 : f32 to vector<16x128xf32>
      %70 = arith.subf %54, %69 : vector<16x128xf32>
      %71 = math.exp %70 : vector<16x128xf32>
      %cst_36 = arith.constant dense<0.000000e+00> : vector<16xf32>
      %72 = vector.multi_reduction <add>, %71, %cst_36 [1] : vector<16x128xf32> to vector<16xf32>
      %73 = vector.shape_cast %72 : vector<16xf32> to vector<16x1xf32>
      %74 = arith.addf %68, %73 : vector<16x1xf32>
      %c0_37 = arith.constant 0 : index
      %c0_38 = arith.constant 0 : index
      %75 = vector.load %arg6[%c0_37, %c0_38] : memref<16x1xf32, #tpu.memory_space<vmem>>, vector<16x1xf32>
      tpu.vector_store %arg6[%c0_37, %c0_38], %74 {strides = array<i32>} : memref<16x1xf32, #tpu.memory_space<vmem>>, vector<16x1xf32>,
    } else {
    }
    %c0_i32_19 = arith.constant 0 : i32
    %48 = arith.cmpi eq, %arg1, %c0_i32_19 : i32
    %49 = arith.extui %48 : i1 to i32
    %c0_i32_20 = arith.constant 0 : i32
    %50 = arith.cmpi ne, %49, %c0_i32_20 : i32
    scf.if %50 {
      %c0_21 = arith.constant 0 : index
      %c0_22 = arith.constant 0 : index
      %51 = vector.load %arg6[%c0_21, %c0_22] : memref<16x1xf32, #tpu.memory_space<vmem>>, vector<16x1xf32>
      %52 = math.log %51 : vector<16x1xf32>
      %cst_23 = arith.constant 3.000000e+01 : f32
      %53 = vector.broadcast %cst_23 : f32 to vector<16x1xf32>
      %54 = arith.addf %53, %52 : vector<16x1xf32>
      %c0_24 = arith.constant 0 : index
      %c0_25 = arith.constant 0 : index
      %55 = vector.load %arg7[%c0_24, %c0_25] : memref<16x1xf32, #tpu.memory_space<vmem>>, vector<16x1xf32>
      %cst_26 = arith.constant 0.899999976 : f32
      %56 = vector.broadcast %cst_26 : f32 to vector<16x1xf32>
      %57 = arith.mulf %56, %55 : vector<16x1xf32>
      %c0_27 = arith.constant 0 : index
      %c0_28 = arith.constant 0 : index
      %58 = vector.load %arg8[%c0_27, %c0_28] : memref<16x1xf32, #tpu.memory_space<vmem>>, vector<16x1xf32>
      %cst_29 = arith.constant 3.125000e-03 : f32
      %59 = vector.broadcast %cst_29 : f32 to vector<16x1xf32>
      %60 = arith.mulf %59, %58 : vector<16x1xf32>
      %61 = arith.addf %57, %60 : vector<16x1xf32>
      %62 = arith.subf %54, %61 : vector<16x1xf32>
      %c0_30 = arith.constant 0 : index
      %c0_31 = arith.constant 0 : index
      %63 = vector.load %arg5[%c0_30, %c0_31] : memref<16x1xf32, #tpu.memory_space<vmem>>, vector<16x1xf32>
      tpu.vector_store %arg5[%c0_30, %c0_31], %62 {strides = array<i32>} : memref<16x1xf32, #tpu.memory_space<vmem>>, vector<16x1xf32>,
    } else {
    }
    return
  }
  func.func @transform_0(%arg0: i32, %arg1: i32) -> (i32, i32) {
    %c0_i32 = arith.constant 0 : i32
    %c0_i32_0 = arith.constant 0 : i32
    return %arg0, %c0_i32 : i32, i32
  }
  func.func @transform_1(%arg0: i32, %arg1: i32) -> (i32, i32) {
    %c0_i32 = arith.constant 0 : i32
    %c0_i32_0 = arith.constant 0 : i32
    return %arg0, %c0_i32 : i32, i32
  }
  func.func @transform_2(%arg0: i32, %arg1: i32) -> (i32, i32) {
    %c0_i32 = arith.constant 0 : i32
    %c0_i32_0 = arith.constant 0 : i32
    return %c0_i32, %arg1 : i32, i32
  }
  func.func @transform_3(%arg0: i32, %arg1: i32) -> (i32, i32) {
    %c0_i32 = arith.constant 0 : i32
    %c0_i32_0 = arith.constant 0 : i32
    return %arg0, %c0_i32 : i32, i32
  }
}

</mosaic_0001>

<bundles_post_ra>
// kernel: tpu_custom_call.1
= control target key start
LH: loop header
LB: loop body
LE: loop exit
PB: predicated region body
PF: predicated region fallthrough
CT: control target
= control target key end

     0   :  { %8 = vsyncpa [#allocation6], 0  ;;  %s435_s12 = smov [#allocation5]   ;;  %s529_s0 = inlined_call_operand.vmem [shape: s32[16,1], index: 0, kind: input, shape index: {}]   ;;  %s530_s1 = inlined_call_operand.vmem [shape: bf16[16,128], index: 1, kind: input, shape index: {}]   ;;  %s531_s2 = inlined_call_operand.hbm [shape: bf16[128,128], index: 2, kind: input, shape index: {}]   ;;  %s532_s3 = inlined_call_operand.vmem [shape: f32[16,1], index: 3, kind: output, shape index: {}]  }
   0x1   :  { %s18_s13 = sshll.u32 %s435_s12, 4  ;;  %s411_s16 = scalar_lea.hbm %s531_s2, 1024  ;;  %s19_s13 = int_to_ptr.vmem [resolvable:$true] %s18_s13 }
   0x2   :  { %p412_p0 = scmp.ne.s32.totalorder %s531_s2, %s411_s16  ;;  %p415_p1 = scmp.lt.u32.totalorder %s411_s16, %s531_s2 }
   0x4   :  { %p417_p2 = pnand %p415_p1, %p412_p0 }
   0x6   :  { %420 = shalt.err (!%p417_p2)
}
   0x7   :  { %s421_s21 = scalar_lea.vmem %s19_s13, 1024  ;;  %p426_p4 = scmp.lt.s32.totalorder %s19_s13, %s19_s13 }
   0x8   :  { %p422_p3 = scmp.ne.s32.totalorder %s19_s13, %s421_s21  ;;  %p427_p5 = scmp.lt.s32.totalorder %s421_s21, %s421_s21 }
   0xa   :  { %p428_p6 = por %p427_p5, %p426_p4 }
   0xc   :  { %p429_p7 = pnand %p428_p6, %p422_p3 }
   0xe   :  { %432 = shalt.err (!%p429_p7)
}
   0xf   :  { %s436_s22 = smov 64   ;;  %s437_s23 = smov 4  }
  0x10   :  { %24 = dma.hbm_to_vmem [thread:$0]  %s531_s2, 1024, %s19_s13, [#allocation6], %s436_s22, %s436_s22, %s437_s23  }
  0x11   :  { %433 = dma.done.wait [#allocation6], 1024  }
  0x12   :  { %434 = vsyncadd [#allocation6], 4294966272  ;;  %v438_v0 = vmov 0.0   ;;  %vm439_vm0 = vmmov 0   ;;  %v440_v1 = vmov 0   ;;  %v390_v2 = vld [vmem:[#allocation5] sm:$0xff]   ;;  %v154_v13 = vlaneseq }
  0x13   :  { %363 = vmatprep.subr.bf16.mxu0 %v438_v0  ;;  %379 = vmatprep.mubr.msk.bf16.mxu0 %vm439_vm0, %v438_v0  ;;  %v391_v3 = vld [vmem:[#allocation5 + $0x8] sm:$0xff]   ;;  %v392_v4 = vld [vmem:[#allocation5 + $0x10] sm:$0xff]   ;;  %v393_v6 = vld [vmem:[#allocation5 + $0x18] sm:$0xff]   ;;  %vm33_vm3 = vcmask 7168  }
  0x14   :  { %389 = vset.pattern.permute.xlu0 %v440_v1  ;;  %364 = vmatpush3.bf16.msra.mxu0 %v390_v2  ;;  %v158_v5 = vld [vmem:[%s529_s0] sm:$0xff]  ;;  %v159_v7 = vld [vmem:[%s529_s0 + $0x8] sm:$0xff]  ;;  %v394_v8 = vld [vmem:[#allocation5 + $0x20] sm:$0xff]   ;;  %v482_v14 = vand.u32 127, %v154_v13  ;;  %38 = vst.msk [vmem:[#allocation4] sm:$0xff] %vm33_vm3, %v438_v0 }
  0x15   :  { %365 = vmatprep.subr.bf16.mxu0 %v438_v0  ;;  %161 = vperm.xlu0 %389, %v158_v5   ;;  %v395_v9 = vld [vmem:[#allocation5 + $0x28] sm:$0xff]   ;;  %v396_v10 = vld [vmem:[#allocation5 + $0x30] sm:$0xff]   ;;  %v397_v11 = vld [vmem:[#allocation5 + $0x38] sm:$0xff]   ;;  %34 = vst.msk [vmem:[#allocation2] sm:$0xff] %vm33_vm3, %v438_v0 }
  0x16   :  { %v398_v12 = vld [vmem:[%s530_s1] sm:$0xff]   ;;  %35 = vst.msk [vmem:[#allocation2 + $0x8] sm:$0xff] %vm33_vm3, %v438_v0  ;;  %36 = vst.msk [vmem:[#allocation3] sm:$0xff] %vm33_vm3, %v438_v0  ;;  %vm266_vm10 = vcmp.lt.s32.totalorder %v482_v14, 32 }
  0x17   :  { %37 = vst.msk [vmem:[#allocation3 + $0x8] sm:$0xff] %vm33_vm3, %v438_v0  ;;  %39 = vst.msk [vmem:[#allocation4 + $0x8] sm:$0xff] %vm33_vm3, %v438_v0 }
  0x18   :  { %366 = vmatpush3.bf16.msra.mxu0 %v391_v3 }
  0x19   :  { %367 = vmatprep.subr.bf16.mxu0 %v438_v0  ;;  %164 = vperm.xlu0 %389, %v159_v7  }
  0x1c   :  { %368 = vmatpush3.bf16.msra.mxu0 %v392_v4 }
  0x1d   :  { %369 = vmatprep.subr.bf16.mxu0 %v438_v0 }
  0x20   :  { %370 = vmatpush3.bf16.msra.mxu0 %v393_v6 }
  0x21   :  { %371 = vmatprep.subr.bf16.mxu0 %v438_v0 }
  0x24   :  { %372 = vmatpush3.bf16.msra.mxu0 %v394_v8 }
  0x25   :  { %373 = vmatprep.subr.bf16.mxu0 %v438_v0 }
  0x28   :  { %374 = vmatpush3.bf16.msra.mxu0 %v395_v9 }
  0x29   :  { %375 = vmatprep.subr.bf16.mxu0 %v438_v0 }
  0x2c   :  { %376 = vmatpush3.bf16.msra.mxu0 %v396_v10 }
  0x2d   :  { %377 = vmatprep.subr.bf16.mxu0 %v438_v0 }
  0x30   :  { %378 = vmatpush3.bf16.msra.mxu0 %v397_v11  ;;  %v271_v11 = vld [vmem:[#allocation4] sm:$0xff] }
  0x33   :  { %380 = vmatmul.mubr.bf16.vlgmr.msra.gmra.mrb[0].mxu0 %v398_v12 }
  0x94   :  { %v162_v15 = vpop.permute.xlu0 %161 }
  0x95   :  { %vm166_vm1 = vcmp.eq.s32.totalorder %v482_v14, %v162_v15  ;;  %v294_v15 = vld [vmem:[#allocation2] sm:$0xff] }
  0x96   :  { %v485_v16 = vsel %vm166_vm1, 1.0, %v438_v0 }
  0x98   :  { %v165_v17 = vpop.permute.xlu0 %164 }
  0x99   :  { %vm167_vm2 = vcmp.eq.s32.totalorder %v482_v14, %v165_v17 }
  0x9a   :  { %v491_v23 = vsel %vm167_vm2, 1.0, %v438_v0 }
 0x106   :  { %v146_v18 = vpop.f32.mrb[0].mxu0 }
 0x107   :  { %v381_v19 = vpop.f32.mrb[1].mxu0  ;;  %v172_v20 = vmul.f32 %v485_v16, %v146_v18 }
 0x108   :  { %v489_v21 = vpop.f32.mrb[2].mxu0  ;;  %v295_v19 = vld [vmem:[#allocation2 + $0x8] sm:$0xff] }
 0x109   :  { %174 = vadd.xlane.f32.xlu1 %v172_v20  ;;  %v382_v22 = vpop.f32.mrb[3].mxu0  ;;  %v173_v24 = vmul.f32 %v491_v23, %v489_v21 }
 0x10d   :  { %176 = vadd.xlane.f32.xlu1 %v173_v24  ;;  %v282_v24 = vld [vmem:[#allocation3] sm:$0xff] }
 0x196   :  { %v175_v25 = vpop.xlane.xlu1 %174 }
 0x197   :  { %v178_v26 = vmul.f32 0.033333335, %v175_v25 }
 0x199   :  { %v180_v27 = vmul.f32 %v178_v26, %v178_v26  ;;  %v200_v41 = vmul.f32 0.921061, %v178_v26  ;;  %v348_v47 = vadd.f32 -0.15576734, %v178_v26  ;;  %vm206_vm8 = vcmp.gt.f32.partialorder %v178_v26, -0.921061 }
 0x19a   :  { %v177_v28 = vpop.xlane.xlu1 %176 }
 0x19b   :  { %v182_v29 = vsub.f32 1.0, %v180_v27  ;;  %v179_v30 = vmul.f32 0.033333335, %v177_v28  ;;  %v283_v28 = vld [vmem:[#allocation3 + $0x8] sm:$0xff] }
 0x19d   :  { %v184_v31 = vmax.f32 %v182_v29, 0.0  ;;  %v181_v32 = vmul.f32 %v179_v30, %v179_v30  ;;  %v201_v49 = vmul.f32 0.921061, %v179_v30  ;;  %v349_v54 = vadd.f32 -0.15576734, %v179_v30 }
 0x19e   :  { %vm207_vm9 = vcmp.gt.f32.partialorder %v179_v30, -0.921061 }
 0x19f   :  { %399 = vrsqrt.f32 %v184_v31  ;;  %v183_v33 = vsub.f32 1.0, %v181_v32  ;;  %vm188_vm4 = vcmp.eq.f32.partialorder %v184_v31, inf  ;;  %v191_v37 = vand.u32 2147483648, %v184_v31 }
 0x1a0   :  { %vm190_vm5 = vcmp.eq.f32.partialorder %v184_v31, 0.0 }
 0x1a1   :  { %v185_v34 = vmax.f32 %v183_v33, 0.0 }
 0x1a3   :  { %401 = vrsqrt.f32 %v185_v34  ;;  %vm195_vm6 = vcmp.eq.f32.partialorder %v185_v34, inf  ;;  %v198_v44 = vand.u32 2147483648, %v185_v34  ;;  %vm197_vm7 = vcmp.eq.f32.partialorder %v185_v34, 0.0 }
 0x1a9   :  { %v400_v35 = vpop.eup %399 }
 0x1aa   :  { %v187_v36 = vmul.f32 %v400_v35, %v184_v31 }
 0x1ac   :  { %v189_v38 = vsel %vm188_vm4, %v184_v31, %v187_v36 }
 0x1ad   :  { %v402_v39 = vpop.eup %401  ;;  %v192_v40 = vsel %vm190_vm5, %v191_v37, %v189_v38 }
 0x1ae   :  { %v194_v42 = vmul.f32 %v402_v39, %v185_v34  ;;  %v202_v43 = vmul.f32 0.38941833, %v192_v40 }
 0x1b0   :  { %v196_v45 = vsel %vm195_vm6, %v185_v34, %v194_v42  ;;  %v204_v46 = vsub.f32 %v200_v41, %v202_v43 }
 0x1b1   :  { %v199_v48 = vsel %vm197_vm7, %v198_v44, %v196_v45 }
 0x1b2   :  { %v203_v50 = vmul.f32 0.38941833, %v199_v48  ;;  %v210_v51 = vsel %vm206_vm8, %v204_v46, %v348_v47 }
 0x1b3   :  { %v212_v52 = vsub.f32 %v210_v51, %v178_v26 }
 0x1b4   :  { %v205_v53 = vsub.f32 %v201_v49, %v203_v50 }
 0x1b5   :  { %v214_v55 = vmul.f32 30.0, %v212_v52 }
 0x1b6   :  { %v211_v56 = vsel %vm207_vm9, %v205_v53, %v349_v54 }
 0x1b7   :  { %v213_v57 = vsub.f32 %v211_v56, %v179_v30  ;;  %v216_v58 = vmul.f32 %v485_v16, %v214_v55 }
 0x1b9   :  { %v215_v59 = vmul.f32 30.0, %v213_v57  ;;  %v218_v60 = vadd.f32 %v216_v58, %v146_v18 }
 0x1bb   :  { %v267_v61 = vsel %vm266_vm10, %v218_v60, -1e+30  ;;  %v269_v62 = vsel %vm266_vm10, %v218_v60, 0.0  ;;  %v217_v63 = vmul.f32 %v491_v23, %v215_v59 }
 0x1bc   :  { %v352_v0 = vadd.f32 -30.0, %v267_v61  ;;  %273 = vadd.xlane.f32.xlu1 %v269_v62  ;;  %v284_v9 = vmul.f32 %v485_v16, %v267_v61 }
 0x1bd   :  { %v219_v1 = vadd.f32 %v217_v63, %v489_v21  ;;  %v272_v21 = vld [vmem:[#allocation4 + $0x8] sm:$0xff] }
 0x1be   :  { %v298_v2 = vmul.f32 1.442695, %v352_v0 }
 0x1bf   :  { %v268_v3 = vsel %vm266_vm10, %v219_v1, -1e+30  ;;  %v270_v8 = vsel %vm266_vm10, %v219_v1, 0.0 }
 0x1c0   :  { %403 = vpow2.f32 %v298_v2  ;;  %v353_v4 = vadd.f32 -30.0, %v268_v3  ;;  %v285_v10 = vmul.f32 %v491_v23, %v268_v3 }
 0x1c2   :  { %v300_v5 = vmul.f32 1.442695, %v353_v4 }
 0x1c4   :  { %405 = vpow2.f32 %v300_v5 }
 0x1ca   :  { %v404_v6 = vpop.eup %403 }
 0x1cb   :  { %302 = vadd.xlane.f32.xlu0 %v404_v6 }
 0x1ce   :  { %v406_v7 = vpop.eup %405 }
 0x1cf   :  { %304 = vadd.xlane.f32.xlu1 %v406_v7 }
 0x1d3   :  { %275 = vadd.xlane.f32.xlu1 %v270_v8 }
 0x1d7   :  { %286 = vadd.xlane.f32.xlu1 %v284_v9 }
 0x1db   :  { %288 = vadd.xlane.f32.xlu1 %v285_v10 }
 0x249   :  { %v274_v12 = vpop.xlane.xlu1 %273 }
 0x24a   :  { %v277_v13 = vadd.f32 %v274_v12, %v271_v11 }
 0x24c   :  { %280 = vst.msk [vmem:[#allocation4] sm:$0xff] %vm33_vm3, %v277_v13 }
 0x253   :  { %v322_v31 = vld [vmem:[#allocation4] sm:$0xff] }
 0x254   :  { %v324_v35 = vmul.f32 0.003125, %v322_v31 }
 0x258   :  { %v303_v17 = vpop.xlane.xlu0 %302 }
 0x259   :  { %v306_v18 = vadd.f32 %v303_v17, %v294_v15 }
 0x25b   :  { %308 = vst.msk [vmem:[#allocation2] sm:$0xff] %vm33_vm3, %v306_v18 }
 0x25c   :  { %v305_v14 = vpop.xlane.xlu1 %304 }
 0x25d   :  { %v307_v20 = vadd.f32 %v305_v14, %v295_v19 }
 0x25f   :  { %309 = vst.msk [vmem:[#allocation2 + $0x8] sm:$0xff] %vm33_vm3, %v307_v20 }
 0x260   :  { %v276_v16 = vpop.xlane.xlu1 %275 }
 0x261   :  { %v278_v22 = vadd.f32 %v276_v16, %v272_v21 }
 0x262   :  { %v310_v23 = vld [vmem:[#allocation2] sm:$0xff] }
 0x263   :  { %407 = vlog2.f32 %v310_v23  ;;  %281 = vst.msk [vmem:[#allocation4 + $0x8] sm:$0xff] %vm33_vm3, %v278_v22 }
 0x264   :  { %v287_v25 = vpop.xlane.xlu1 %286 }
 0x265   :  { %v290_v26 = vadd.f32 %v287_v25, %v282_v24 }
 0x266   :  { %v311_v27 = vld [vmem:[#allocation2 + $0x8] sm:$0xff] }
 0x267   :  { %409 = vlog2.f32 %v311_v27  ;;  %292 = vst.msk [vmem:[#allocation3] sm:$0xff] %vm33_vm3, %v290_v26 }
 0x268   :  { %v289_v29 = vpop.xlane.xlu1 %288 }
 0x269   :  { %v291_v30 = vadd.f32 %v289_v29, %v283_v28 }
 0x26a   :  { %v323_v38 = vld [vmem:[#allocation4 + $0x8] sm:$0xff] }
 0x26b   :  { %293 = vst.msk [vmem:[#allocation3 + $0x8] sm:$0xff] %vm33_vm3, %v291_v30  ;;  %v325_v43 = vmul.f32 0.003125, %v323_v38 }
 0x26d   :  { %v408_v32 = vpop.eup %407 }
 0x26e   :  { %v313_v33 = vmul.f32 0.6931472, %v408_v32  ;;  %v318_v34 = vld [vmem:[#allocation3] sm:$0xff] }
 0x26f   :  { %v320_v36 = vmul.f32 0.9, %v318_v34 }
 0x270   :  { %v316_v37 = vadd.f32 30.0, %v313_v33 }
 0x271   :  { %v410_v39 = vpop.eup %409  ;;  %v326_v40 = vadd.f32 %v324_v35, %v320_v36 }
 0x272   :  { %v315_v41 = vmul.f32 0.6931472, %v410_v39  ;;  %v319_v42 = vld [vmem:[#allocation3 + $0x8] sm:$0xff] }
 0x273   :  { %v328_v44 = vsub.f32 %v316_v37, %v326_v40  ;;  %v321_v45 = vmul.f32 0.9, %v319_v42 }
 0x274   :  { %v317_v46 = vadd.f32 30.0, %v315_v41 }
 0x275   :  { %330 = vst.msk [vmem:[%s532_s3] sm:$0xff] %vm33_vm3, %v328_v44  ;;  %v327_v47 = vadd.f32 %v325_v43, %v321_v45 }
 0x277   :  { %v329_v48 = vsub.f32 %v317_v46, %v327_v47 }
 0x279   :  { %331 = vst.msk [vmem:[%s532_s3 + $0x8] sm:$0xff] %vm33_vm3, %v329_v48 }
 0x27a   :  { %336 = vsyncpa [#allocation6], 1 }

</bundles_post_ra>
